<compile_context>
chip_gen: v6e
topology: v6e:2x2x1
jax: 0.10.0
libtpu: 0.0.40
codegen_flags: <defaults>
</compile_context>

<pallas_src>
import jax
import jax.numpy as jnp
from jax.experimental import pallas as pl
from jax.experimental.pallas import tpu as pltpu

_NUM_CH = 3


def _pseudo_kernel(img_ref, out_ref):
    # img_ref: (1, 3, hw_tile) uint8, out_ref: (1, 3, hw_tile) float32.
    x = img_ref[...]                           # single full-block load (u8)
    nz = (x != 0).astype(jnp.float32)          # bool().float() on narrow dtype
    # BGR flip ([2, 1, 0]) on the channel (second-minor) axis, then one
    # contiguous, lane-dense full-block store.
    out_ref[...] = jnp.concatenate(
        [nz[:, 2:3, :], nz[:, 1:2, :], nz[:, 0:1, :]], axis=1)


def _pick_hw_tile(hw, max_tile_elems=256 * 1024):
    """Largest 128-multiple divisor of `hw` that is <= max_tile_elems.

    Falls back to the full extent (always legal as a block dim) when hw is
    small or no suitable divisor exists.  256K elems keeps the double-buffered
    (u8 in + f32 out) footprint ~7.5 MiB — safe on v7x's smaller VMEM.
    """
    if hw <= max_tile_elems:
        return hw
    t = max_tile_elems - (max_tile_elems % 128)
    while t >= 128:
        if hw % t == 0:
            return t
        t -= 128
    return hw


def pseudo_model_forward(images_u8):
    """images_u8: [B, 3, H, W] uint8 pixel values (as read_image returns).

    Returns logits [B, 3, H, W] float32: channels reversed ([2, 1, 0]) and
    binarized (nonzero -> 1.0), matching PseudoModel.forward + stack.
    """
    B, C, H, W = images_u8.shape
    assert C == _NUM_CH, "PseudoModel pseudo-GTs are 3-channel images"
    hw = H * W

    # Free metadata reshape: lane-dense flattened spatial axis.
    x = images_u8.reshape(B, C, hw)

    hw_tile = _pick_hw_tile(hw)
    n_hw = hw // hw_tile

    out = pl.pallas_call(
        _pseudo_kernel,
        out_shape=jax.ShapeDtypeStruct((B, C, hw), jnp.float32),
        grid_spec=pl.GridSpec(
            grid=(B, n_hw),
            in_specs=[pl.BlockSpec((1, C, hw_tile), lambda b, s: (b, 0, s))],
            out_specs=pl.BlockSpec((1, C, hw_tile), lambda b, s: (b, 0, s)),
        ),
        compiler_params=pltpu.CompilerParams(
            dimension_semantics=("parallel", "parallel"),
        ),
    )(x)
    return out.reshape(B, C, H, W)


if __name__ == "__main__":
    key = jax.random.PRNGKey(0)

    # Synthetic pseudo-GT images: batch=2, 3 channels, 16x16 spatial,
    # uint8 pixel values in [0, 255] including some exact zeros.
    B, C, H, W = 2, 3, 16, 16
    raw = jax.random.randint(key, (B, C, H, W), minval=0, maxval=256,
                             dtype=jnp.int32)
    images = raw.astype(jnp.uint8)

    # Dummy parameter from the module (zeros(1)); unused in forward compute.
    dummy_parameter = jnp.zeros((1,), dtype=jnp.float32)

    logits = pseudo_model_forward(images)
    logits = jax.block_until_ready(logits)

    # Reference in plain JAX: channel flip then binarize.
    ref = (images[:, ::-1, :, :].astype(jnp.int32) != 0).astype(jnp.float32)
    assert logits.shape == (B, C, H, W)
    assert logits.dtype == jnp.float32
    assert bool(jnp.all(logits == ref))

    print("KERNEL_OK")
</pallas_src>

<mosaic_0001>
module attributes {stable_mosaic.version = 11 : i64} {
  func.func @_pseudo_kernel(%arg0: i32, %arg1: i32, %arg2: memref<1x3x256xi8, #tpu.memory_space<vmem>>, %arg3: memref<1x3x256xf32, #tpu.memory_space<vmem>>) attributes {dimension_semantics = [#tpu.dimension_semantics<parallel>, #tpu.dimension_semantics<parallel>], iteration_bounds = array<i64: 2, 1>, scalar_prefetch = 0 : i64, scratch_operands = 0 : i64, tpu.core_type = #tpu.core_type<tc>, window_params = [{transform_indices = @transform_0, window_bounds = array<i64: 1, 3, 256>}, {transform_indices = @transform_1, window_bounds = array<i64: 1, 3, 256>}]} {
    %c0 = arith.constant 0 : index
    %c0_0 = arith.constant 0 : index
    %c0_1 = arith.constant 0 : index
    %0 = vector.load %arg2[%c0, %c0_0, %c0_1] : memref<1x3x256xi8, #tpu.memory_space<vmem>>, vector<1x3x256xi8>
    %c0_i8 = arith.constant 0 : i8
    %1 = vector.broadcast %c0_i8 : i8 to vector<1x3x256xi8>
    %2 = arith.cmpi ne, %0, %1 : vector<1x3x256xi8>
    %3 = arith.extui %2 : vector<1x3x256xi1> to vector<1x3x256xi32>
    %4 = arith.sitofp %3 : vector<1x3x256xi32> to vector<1x3x256xf32>
    %5 = vector.extract_strided_slice %4 {offsets = [0, 2, 0], sizes = [1, 1, 256], strides = [1, 1, 1]} : vector<1x3x256xf32> to vector<1x1x256xf32>
    %6 = vector.extract_strided_slice %4 {offsets = [0, 1, 0], sizes = [1, 1, 256], strides = [1, 1, 1]} : vector<1x3x256xf32> to vector<1x1x256xf32>
    %7 = vector.extract_strided_slice %4 {offsets = [0, 0, 0], sizes = [1, 1, 256], strides = [1, 1, 1]} : vector<1x3x256xf32> to vector<1x1x256xf32>
    %8 = tpu.concatenate %5, %6, %7 in 1 : vector<1x1x256xf32>, vector<1x1x256xf32>, vector<1x1x256xf32> -> vector<1x3x256xf32>
    %c0_2 = arith.constant 0 : index
    %c0_3 = arith.constant 0 : index
    %c0_4 = arith.constant 0 : index
    %9 = vector.load %arg3[%c0_2, %c0_3, %c0_4] : memref<1x3x256xf32, #tpu.memory_space<vmem>>, vector<1x3x256xf32>
    tpu.vector_store %arg3[%c0_2, %c0_3, %c0_4], %8 {strides = array<i32>} : memref<1x3x256xf32, #tpu.memory_space<vmem>>, vector<1x3x256xf32>,
    return
  }
  func.func @transform_0(%arg0: i32, %arg1: i32) -> (i32, i32, i32) {
    %c0_i32 = arith.constant 0 : i32
    %c0_i32_0 = arith.constant 0 : i32
    return %arg0, %c0_i32, %arg1 : i32, i32, i32
  }
  func.func @transform_1(%arg0: i32, %arg1: i32) -> (i32, i32, i32) {
    %c0_i32 = arith.constant 0 : i32
    %c0_i32_0 = arith.constant 0 : i32
    return %arg0, %c0_i32, %arg1 : i32, i32, i32
  }
}

</mosaic_0001>

<bundles_post_ra>
// kernel: tpu_custom_call.1
= control target key start
LH: loop header
LB: loop body
LE: loop exit
PB: predicated region body
PF: predicated region fallthrough
CT: control target
= control target key end

     0   :  { %6 = vsyncpa [#allocation3], 0  ;;  %s559_s0 = inlined_call_operand.hbm [shape: u8[2,3,256], index: 0, kind: input, shape index: {}]   ;;  %s560_s1 = inlined_call_operand.vmem [shape: f32[2,3,256], index: 1, kind: output, shape index: {}]  }
   0x1   :  { %8 = vsyncpa [#allocation3 + $0x1], 0  ;;  %s459_s6 = smov 0   ;;  %s461_s7 = smov 0  }
   0x2   :  { %s463_s8 = smov 0   ;;  %s465_s9 = smov 0  }
   0x3   :  { %s467_s10 = smov 0   ;;  %s469_s11 = smov 0  }
   0x4 LB: > { %s292_s12 = sadd.s32 4294967295, %s444_s11   ;;  %s26_s13 = sadd.s32 1, %s440_s10  ;;  %s444_s11 = sphi %s469_s11, %s14_s11   ;;  %s440_s10 = sphi %s467_s10, %s568_s10   ;;  %s436_s9 = sphi %s465_s9, %s567_s9   ;;  %s432_s8 = sphi %s463_s8, %s566_s8   ;;  %s428_s7 = sphi %s461_s7, %s565_s7   ;;  %s424_s6 = sphi %s459_s6, %s564_s6  }
   0x5   : > { %p28_p0 = scmp.ge.s32.totalorder %s26_s13, 2  ;;  %s35_s14 = sadd.s32 1, %s432_s8 }
   0x6   : > { %p42_p1 = scmp.ne.s32.totalorder %s432_s8, %s428_s7  ;;  %p43_p2 = scmp.eq.s32.totalorder %s444_s11, 0 }
   0x7   : > { %s570_s13 = smov (%p28_p0, %s26_s13), 0  ;;  %p48_p4 = scmp.ne.s32.totalorder %s428_s7, %s424_s6 }
   0x8   : > { %p495_p3 = por %p43_p2, %p42_p1  ;;  %s30_s16 = ssub.s32 %s440_s10, %s570_s13 }
   0x9   : > { %p49_p5 = scmp.eq.s32.totalorder %s292_s12, 0  ;;  %p33_p6 = scmp.eq.s32.totalorder %s30_s16, 0 }
   0xa   : > { %p315_p8 = scmp.lt.s32.totalorder %s444_s11, 2  ;;  %s100_s19 = sand.u32 1, %s432_s8  }
   0xb   : > { %p502_p7 = por %p49_p5, %p48_p4  ;;  %s307_s20 = sshll.u32 %s440_s10, 5 }
   0xc   : > { %s508_s18 = scalar_select %p33_p6, %s432_s8, %s35_s14  }
   0xd   : > { %s296_s21 = sshll.u32 %s100_s19, 1  ;;  %s112_s24 = scalar_lea.hbm %s559_s0, %s307_s20 }
   0xe   : > { %s104_s25 = scalar_lea.vmem [#allocation2], %s296_s21  ;;  %p517_p9 = pnand %p315_p8, %p495_p3 }
   0xf   : > { %s114_s26 = sshll.u32 %s104_s25, 4  ;;  %p299_p10 = scmp.ge.s32.totalorder %s444_s11, 1  ;;  %s115_s26 = int_to_ptr.vmem [resolvable:$true] %s114_s26 }
  0x10   : > { %p119_p11 = scmp.lt.s32.totalorder %s444_s11, 3  ;;  %s101_s28 = scalar_lea.sflag [#allocation3], %s100_s19 }
  0x11   : > { %p368_p12 = pneg %p517_p9  ;;  %s379_s29 = scalar_lea.vmem %s115_s26, 32 }
  0x12   : > { %p380_p13 = scmp.ne.s32.totalorder %s115_s26, %s379_s29  ;;  %s446_s30 = smov [#allocation2]  }
  0x13   : > { %s384_s2 = sshll.u32 %s446_s30, 4  ;;  %s385_s2 = int_to_ptr.vmem [resolvable:$false] %s384_s2 }
  0x14   : > { %p382_p0 = pnand %p380_p13, %p368_p12  ;;  %s386_s3 = scalar_lea.vmem %s385_s2, 64 }
  0x15   : > { %p387_p2 = scmp.lt.s32.totalorder %s115_s26, %s385_s2  ;;  %p388_p3 = scmp.lt.s32.totalorder %s386_s3, %s379_s29 }
  0x16   : > { %p383_p1 = pneg %p382_p0 }
  0x17   : > { %p389_p4 = por %p388_p3, %p387_p2 }
  0x19   : > { %p390_p5 = pnand %p389_p4, %p383_p1 }
  0x1b   : > { %393 = shalt.err (!%p390_p5)
}
  0x1c   : > { %314 = dma.hbm_to_vmem [thread:$0]  (!%p517_p9), %s112_s24, 32, %s115_s26, %s101_s28  }
  0x1d   : > { %p120_p6 = pnand %p299_p10, %p119_p11 }
  0x1e   : > { %s125_s4 = sand.u32 (!%p120_p6), 1, %s428_s7  }
  0x1f   : > { %123 = sbr.rel (%p120_p6) target bundleno = 55 (0x37), region = 24  ;;  %s300_s5 = sshll.u32 (!%p120_p6), %s125_s4, 1 }
  0x20   : > { %s126_s6 = scalar_lea.sflag (!%p120_p6), [#allocation3], %s125_s4  ;;  %s129_s12 = scalar_lea.vmem (!%p120_p6), [#allocation2], %s300_s5 }
  0x24   : > { %419 = dma.done.wait (%p502_p7), %s126_s6, 32  }
  0x25   : > { %421 = vsyncadd (%p502_p7), %s126_s6, 4294967264  ;;  %v165_v0 = vld [vmem:[%s129_s12] sm:$0x3]  ;;  %v447_v1 = vmov 0   ;;  %p154_p8 = scmp.lt.s32.totalorder %s436_s9, 1  ;;  %v448_v5 = vmov 0.0  }
  0x26   : > { %vm166_vm0 = vnez %v165_v0  ;;  %vm186_vm2 = vcmask 1040384   ;;  %vm189_vm4 = vcmask 1041408  }
  0x27   : > { %v167_v2 = vsel %vm166_vm0, 16843009, %v447_v1  ;;  %s572_s9 = smov (!%p154_p8, %s436_s9), 1 }
  0x28   : > { %v168_v3 = vunpack.c.0.s8 %v167_v2  ;;  %s308_s14 = sshll.u32 %s572_s9, 3 }
  0x29   : > { %s161_s17 = scalar_lea.vmem %s560_s1, %s308_s14 }
  0x2a   : > { %vm169_vm1 = vcmp.ne.s32.totalorder %v168_v3, 0 }
  0x2b   : > { %v170_v4 = vsel %vm169_vm1, 1, %v447_v1  ;;  %v303_v6 = vsel %vm169_vm1, 1.0, %v448_v5 }
  0x2c   : > { %v171_v7 = vcombine.high %v170_v4, %v170_v4  ;;  %v178_v8 = vrot.slane %v303_v6, 2  ;;  %v182_v9 = vrot.slane %v303_v6, 6 }
  0x2e   : > { %vm172_vm3 = vcmp.ne.s32.totalorder %v171_v7, 0  ;;  %v187_v10 = vsel %vm186_vm2, %v178_v8, %v303_v6 }
  0x2f   : > { %v304_v11 = vsel %vm172_vm3, 1.0, %v448_v5  ;;  %v190_v14 = vsel %vm189_vm4, %v187_v10, %v182_v9 }
  0x30   : > { %v179_v12 = vrot.slane %v304_v11, 2  ;;  %v183_v13 = vrot.slane %v304_v11, 6 }
  0x32   : > { %v188_v15 = vsel %vm186_vm2, %v179_v12, %v304_v11 }
  0x33   : > { %v191_v16 = vsel %vm189_vm4, %v188_v15, %v183_v13 }
  0x34   : > { %v194_v17 = vcombine.low %v190_v14, %v191_v16 }
  0x36   : > { %196 = vst [vmem:[%s161_s17] sm:$0x77] %v194_v17 }
  0x37 PF: > { %s14_s11 = sadd.s32 1, %s444_s11   ;;  %s564_s6 = smov %s428_s7 }
  0x38   : > { %p11_p7 = scmp.ge.s32.totalorder %s14_s11, 4   ;;  %s565_s7 = smov %s432_s8 }
  0x39   : > { %s566_s8 = smov %s508_s18  ;;  %s567_s9 = smov %s440_s10 }
  0x3a   : > { %s568_s10 = smov %s570_s13  ;;  %13 = sbr.rel (!%p11_p7) target bundleno = 4 (0x4), region = 64 }
  0x3f   :  { %227 = vsyncpa [#allocation3], 1 }
  0x40   :  { %229 = vsyncpa [#allocation3 + $0x1], 1 }

</bundles_post_ra>
